<compile_context>
chip_gen: v6e
topology: v6e:2x2x1
jax: 0.10.0
libtpu: 0.0.40
codegen_flags: <defaults>
</compile_context>

<pallas_src>
import jax
import jax.numpy as jnp
from jax.experimental import pallas as pl
from jax.experimental.pallas import tpu as pltpu


def resmixer_head_kernel(tok_ref, wcat_ref, bcat_ref, out_ref):
    tn, hw, c = tok_ref.shape
    # Fold the token mean-pool into the matmul: per-token dot fills the MXU
    # with M = tn*hw rows; the extra FLOPs are free (kernel is HBM-bound).
    x = tok_ref[...].reshape(tn * hw, c)
    y = jnp.dot(x, wcat_ref[...], preferred_element_type=jnp.float32)
    # mean over the HW token groups (sublane reduce), then add fused bias.
    pooled = jnp.mean(y.reshape(tn, hw, -1), axis=1)
    out_ref[...] = (pooled + bcat_ref[...]).astype(out_ref.dtype)


def _choose_batch_tile(n, hw, c, itemsize, vmem_budget_bytes, max_batch_tile):
    """Largest batch tile whose double-buffered feature slab fits the budget.

    The budget (default 8 MiB) is deliberately conservative so the same tile
    is safe on v5e (16 MiB scoped-VMEM default) and v7x (64 MiB physical VMEM).
    """
    per_row = 2 * hw * c * itemsize          # double-buffered bytes per batch row
    tn = max(1, vmem_budget_bytes // per_row)
    if max_batch_tile is not None:
        tn = min(tn, max_batch_tile)
    if tn >= n:
        return n
    # Output block's sublane dim must stay 8-aligned (or equal the full N).
    return max(8, (tn // 8) * 8)


def resmixer_head(feat_nchw, w1, b1, w2, b2, *, max_batch_tile=None,
                  vmem_budget_bytes=8 * 1024 * 1024):
    """Fused ResMixer head.

    feat_nchw: (N, C, H, W) pre-pool token/feature map (C = mixer token width).
    w1/b1:     mixer classifier head Linear(C -> 64).
    w2/b2:     ResMixer.fc Linear(64 -> n_class).
    Returns (out_feature: (N, 64), out: (N, n_class)).
    """
    N, C, H, W = feat_nchw.shape
    HW = H * W
    hidden = w1.shape[1]
    n_class = w2.shape[1]

    # (1) lane-dense layout: channel axis last -> (N, HW, C).
    tokens = jnp.transpose(feat_nchw.reshape(N, C, HW), (0, 2, 1))

    # (5) fuse the two Linears:  logits = pooled@(W1@W2) + (b1@W2 + b2)
    w12 = w1 @ w2
    b12 = b1 @ w2 + b2
    wcat = jnp.concatenate([w1, w12], axis=1)        # (C, hidden + n_class)
    bcat = jnp.concatenate([b1, b12], axis=0)        # (hidden + n_class,)

    # Lane-dense output slab: pad the fused output width to a multiple of 128.
    out_cols = hidden + n_class
    out_pad = ((out_cols + 127) // 128) * 128
    wcat = jnp.pad(wcat, ((0, 0), (0, out_pad - out_cols)))
    bcat = jnp.pad(bcat, (0, out_pad - out_cols)).reshape(1, out_pad)

    # (6) bf16 activations -> bf16 MXU inputs, f32 accumulation. Bias stays f32.
    if tokens.dtype == jnp.bfloat16:
        wcat = wcat.astype(jnp.bfloat16)

    tn = _choose_batch_tile(N, HW, C, tokens.dtype.itemsize,
                            vmem_budget_bytes, max_batch_tile)
    grid = (pl.cdiv(N, tn),)

    # (7) advisory cost for the surrounding XLA schedule.
    cost = pl.CostEstimate(
        flops=2 * N * HW * C * out_pad,
        transcendentals=0,
        bytes_accessed=(tokens.size * tokens.dtype.itemsize
                        + wcat.size * wcat.dtype.itemsize
                        + bcat.size * 4
                        + N * out_pad * 4),
    )

    out = pl.pallas_call(
        resmixer_head_kernel,
        out_shape=jax.ShapeDtypeStruct((N, out_pad), jnp.float32),
        grid=grid,
        in_specs=[
            pl.BlockSpec((tn, HW, C), lambda i: (i, 0, 0)),   # batch-tiled feat
            pl.BlockSpec((C, out_pad), lambda i: (0, 0)),     # resident weights
            pl.BlockSpec((1, out_pad), lambda i: (0, 0)),     # resident bias
        ],
        out_specs=pl.BlockSpec((tn, out_pad), lambda i: (i, 0)),
        compiler_params=pltpu.CompilerParams(
            dimension_semantics=("parallel",)),               # (2) megacore-shardable
        cost_estimate=cost,
    )(tokens, wcat, bcat)

    out_feature = out[:, :hidden]
    logits = out[:, hidden:hidden + n_class]
    return out_feature, logits


def _init_linear(key, fan_in, fan_out):
    """Deterministic init mirroring nn.Linear's default U(-1/sqrt(fan_in), +)."""
    kw, kb = jax.random.split(key)
    bound = 1.0 / (fan_in ** 0.5)
    w = jax.random.uniform(kw, (fan_in, fan_out), jnp.float32, -bound, bound)
    b = jax.random.uniform(kb, (fan_out,), jnp.float32, -bound, bound)
    return w, b


if __name__ == "__main__":
    key = jax.random.PRNGKey(0)
    k_feat, k_head, k_fc = jax.random.split(key, 3)

    # Shapes implied by ResMixer: mlp_mixer_s16 with image_size=64 / patch 16
    # -> 4x4 = 16 tokens, token width 512; mixer head -> 64-d feature;
    # fc: Linear(64, n_class). Small batch N=16.
    N, C, H, W = 16, 512, 4, 4
    hidden, n_class = 64, 10

    feat = jax.random.normal(k_feat, (N, C, H, W), jnp.float32)
    w1, b1 = _init_linear(k_head, C, hidden)        # mixer classifier head
    w2, b2 = _init_linear(k_fc, hidden, n_class)    # ResMixer.fc

    # f32 path; max_batch_tile=8 -> 2 grid steps, exercises the pipelined grid.
    out_feature, out = resmixer_head(feat, w1, b1, w2, b2, max_batch_tile=8)
    jax.block_until_ready((out_feature, out))

    # Pure-JAX reference of the same forward semantics.
    pooled_ref = jnp.mean(feat.reshape(N, C, H * W), axis=-1)
    feat_ref = pooled_ref @ w1 + b1
    logits_ref = feat_ref @ w2 + b2

    assert out_feature.shape == (N, hidden) and out.shape == (N, n_class)
    assert jnp.allclose(out_feature, feat_ref, atol=1e-4, rtol=1e-4)
    assert jnp.allclose(out, logits_ref, atol=1e-4, rtol=1e-4)

    # bf16-activation path (halves the dominant HBM read; f32 accumulation).
    out_feature_bf, out_bf = resmixer_head(
        feat.astype(jnp.bfloat16), w1, b1, w2, b2, max_batch_tile=8)
    jax.block_until_ready((out_feature_bf, out_bf))
    assert jnp.allclose(out_feature_bf, feat_ref, atol=3e-2, rtol=3e-2)
    assert jnp.allclose(out_bf, logits_ref, atol=3e-2, rtol=3e-2)

    print("KERNEL_OK")
</pallas_src>

<mosaic_0001>
module attributes {stable_mosaic.version = 11 : i64} {
  func.func @resmixer_head_kernel(%arg0: i32, %arg1: memref<8x16x512xf32, #tpu.memory_space<vmem>>, %arg2: memref<512x128xf32, #tpu.memory_space<vmem>>, %arg3: memref<1x128xf32, #tpu.memory_space<vmem>>, %arg4: memref<8x128xf32, #tpu.memory_space<vmem>>) attributes {dimension_semantics = [#tpu.dimension_semantics<parallel>], iteration_bounds = array<i64: 2>, scalar_prefetch = 0 : i64, scratch_operands = 0 : i64, tpu.core_type = #tpu.core_type<tc>, window_params = [{transform_indices = @transform_0, window_bounds = array<i64: 8, 16, 512>}, {pipeline_mode = #tpu.pipeline_mode<synchronous>, transform_indices = @transform_1, window_bounds = array<i64: 512, 128>}, {pipeline_mode = #tpu.pipeline_mode<synchronous>, transform_indices = @transform_2, window_bounds = array<i64: 1, 128>}, {transform_indices = @transform_3, window_bounds = array<i64: 8, 128>}]} {
    %c0 = arith.constant 0 : index
    %c0_0 = arith.constant 0 : index
    %c0_1 = arith.constant 0 : index
    %0 = vector.load %arg1[%c0, %c0_0, %c0_1] : memref<8x16x512xf32, #tpu.memory_space<vmem>>, vector<8x16x512xf32>
    %1 = vector.shape_cast %0 : vector<8x16x512xf32> to vector<128x512xf32>
    %c0_2 = arith.constant 0 : index
    %c0_3 = arith.constant 0 : index
    %2 = vector.load %arg2[%c0_2, %c0_3] : memref<512x128xf32, #tpu.memory_space<vmem>>, vector<512x128xf32>
    %cst = arith.constant dense<0.000000e+00> : vector<128x128xf32>
    %3 = tpu.matmul %1, %2, %cst {dimension_numbers = #tpu.dot_dimension_numbers<[1], [0], [0], [1], [0, 0, 1, 1], [], []>} : vector<128x512xf32>, vector<512x128xf32>, vector<128x128xf32> -> vector<128x128xf32>
    %4 = vector.shape_cast %3 : vector<128x128xf32> to vector<8x16x128xf32>
    %cst_4 = arith.constant dense<0.000000e+00> : vector<8x128xf32>
    %5 = vector.multi_reduction <add>, %4, %cst_4 [1] : vector<8x16x128xf32> to vector<8x128xf32>
    %cst_5 = arith.constant 1.600000e+01 : f32
    %6 = vector.broadcast %cst_5 : f32 to vector<8x128xf32>
    %7 = arith.divf %5, %6 : vector<8x128xf32>
    %c0_6 = arith.constant 0 : index
    %c0_7 = arith.constant 0 : index
    %8 = vector.load %arg3[%c0_6, %c0_7] : memref<1x128xf32, #tpu.memory_space<vmem>>, vector<1x128xf32>
    %9 = vector.broadcast %8 : vector<1x128xf32> to vector<8x128xf32>
    %10 = arith.addf %7, %9 : vector<8x128xf32>
    %c0_8 = arith.constant 0 : index
    %c0_9 = arith.constant 0 : index
    %11 = vector.load %arg4[%c0_8, %c0_9] : memref<8x128xf32, #tpu.memory_space<vmem>>, vector<8x128xf32>
    tpu.vector_store %arg4[%c0_8, %c0_9], %10 {strides = array<i32>} : memref<8x128xf32, #tpu.memory_space<vmem>>, vector<8x128xf32>,
    return
  }
  func.func @transform_0(%arg0: i32) -> (i32, i32, i32) {
    %c0_i32 = arith.constant 0 : i32
    %c0_i32_0 = arith.constant 0 : i32
    %c0_i32_1 = arith.constant 0 : i32
    return %arg0, %c0_i32, %c0_i32_0 : i32, i32, i32
  }
  func.func @transform_1(%arg0: i32) -> (i32, i32) {
    %c0_i32 = arith.constant 0 : i32
    %c0_i32_0 = arith.constant 0 : i32
    %c0_i32_1 = arith.constant 0 : i32
    return %c0_i32, %c0_i32_0 : i32, i32
  }
  func.func @transform_2(%arg0: i32) -> (i32, i32) {
    %c0_i32 = arith.constant 0 : i32
    %c0_i32_0 = arith.constant 0 : i32
    %c0_i32_1 = arith.constant 0 : i32
    return %c0_i32, %c0_i32_0 : i32, i32
  }
  func.func @transform_3(%arg0: i32) -> (i32, i32) {
    %c0_i32 = arith.constant 0 : i32
    %c0_i32_0 = arith.constant 0 : i32
    return %arg0, %c0_i32 : i32, i32
  }
}

</mosaic_0001>

<bundles_post_ra>
// kernel: tpu_custom_call.1
= control target key start
LH: loop header
LB: loop body
LE: loop exit
PB: predicated region body
PF: predicated region fallthrough
CT: control target
= control target key end

     0   :  { %8 = vsyncpa [#allocation3], 0  ;;  %s1459_s0 = inlined_call_operand.hbm [shape: f32[16,16,512], index: 0, kind: input, shape index: {}]   ;;  %s1460_s1 = inlined_call_operand.hbm [shape: f32[512,128], index: 1, kind: input, shape index: {}]   ;;  %s1461_s2 = inlined_call_operand.vmem [shape: f32[1,128], index: 2, kind: input, shape index: {}]   ;;  %s1462_s3 = inlined_call_operand.hbm [shape: f32[16,128], index: 3, kind: output, shape index: {}]  }
   0x1   :  { %10 = vsyncpa [#allocation3 + $0x1], 0 }
   0x2   :  { %11 = vsyncpa [#allocation6], 0 }
   0x3   :  { %12 = vsyncpa [#allocation4], 0 }
   0x4   :  { %14 = vsyncpa [#allocation4 + $0x1], 0  ;;  %s1220_s12 = smov 0   ;;  %s1222_s13 = smov 0  }
   0x5   :  { %s1224_s14 = smov 0   ;;  %s1226_s15 = smov 0  }
   0x6 LB: > { %s1241_s16 = sadd.s32 4294967295, %s1191_s15   ;;  %s829_s17 = sadd.s32 4294967294, %s1191_s15   ;;  %s1191_s15 = sphi %s1226_s15, %s1484_s15   ;;  %s1187_s14 = sphi %s1224_s14, %s1483_s14   ;;  %s1183_s13 = sphi %s1222_s13, %s1482_s13   ;;  %s1179_s12 = sphi %s1220_s12, %s1481_s12  }
   0x7   : > { %p40_p0 = scmp.ne.s32.totalorder %s1183_s13, %s1179_s12  ;;  %p1463_p1 = scmp.eq.s32.totalorder %s1241_s16, 0 }
   0x8   : > { %p112_p3 = scmp.eq.s32.totalorder %s829_s17, 1  ;;  %p830_p5 = scmp.ge.s32.totalorder %s1191_s15, 1 }
   0x9   : > { %p1250_p4 = por %p1463_p1, %p40_p0  ;;  %p119_p7 = scmp.lt.s32.totalorder %s1191_s15, 3 }
   0xa   : > { %p1255_p6 = por %p112_p3, %p40_p0  ;;  %s1193_s21 = smov [#allocation5]  }
   0xb   : > { %s1467_s18 = scalar_select %p1250_p4, 1, 0 }
   0xc   : > { %s1468_s19 = scalar_select %p1255_p6, 1, 0 }
   0xd   : > { %p1260_p8 = pnand %p830_p5, %p119_p7  ;;  %s131_s22 = sshll.u32 %s1193_s21, 4  ;;  %s132_s22 = int_to_ptr.vmem [resolvable:$true] %s131_s22 }
   0xe   : > { %s1274_s24 = sadd.s32 1, %s1191_s15   ;;  %s27_s25 = sadd.s32 1, %s1187_s14 }
   0xf   : > { %s1469_s20 = scalar_select %p1260_p8, 1, 0 }
  0x10   : > { %p1016_p9 = pneg %p1260_p8  ;;  %s24_s26 = ssub.s32 %s1191_s15, %s1274_s24 }
  0x11   : > { %s1080_s27 = scalar_lea.vmem %s132_s22, 8192  ;;  %p1088_p5 = scmp.lt.s32.totalorder %s132_s22, %s132_s22 }
  0x12   : > { %p1269_p11 = pnand %p1016_p9, %p1463_p1  ;;  %p1081_p13 = scmp.ne.s32.totalorder %s132_s22, %s1080_s27 }
  0x13   : > { %p1089_p7 = scmp.lt.s32.totalorder %s1080_s27, %s1080_s27 }
  0x14   : > { %p1071_p12 = pneg %p1269_p11 }
  0x15   : > { %p1090_p10 = por %p1089_p7, %p1088_p5 }
  0x16   : > { %p1083_p0 = pnand %p1081_p13, %p1071_p12 }
  0x18   : > { %p1084_p3 = pneg %p1083_p0 }
  0x1a   : > { %p1091_p2 = pnand %p1090_p10, %p1084_p3 }
  0x1c   : > { %1094 = shalt.err (!%p1091_p2)
}
  0x1d   : > { %s1194_s28 = smov 128   ;;  %s1195_s29 = smov 8  }
  0x1e   : > { %1019 = dma.hbm_to_vmem [thread:$0]  (!%p1269_p11), %s1460_s1, 8192, %s132_s22, [#allocation6], %s1194_s28, %s1194_s28, %s1195_s29  }
  0x1f   : > { %p25_p9 = scmp.eq.s32.totalorder %s24_s26, 0  ;;  %p34_p12 = scmp.ne.s32.totalorder %s1187_s14, %s1183_s13 }
  0x20   : > { %p35_p10 = scmp.eq.s32.totalorder %s1191_s15, 0  ;;  %p1029_p2 = scmp.lt.s32.totalorder %s1191_s15, 2 }
  0x21   : > { %s1291_s5 = scalar_select %p25_p9, %s1187_s14, %s27_s25  }
  0x22   : > { %p36_p13 = por %p35_p10, %p34_p12  ;;  %p1471_p0 = scmp.eq.s32.totalorder %s1241_s16, 1 }
  0x23   : > { %s148_s7 = sand.u32 1, %s1187_s14   ;;  %s847_s8 = sshll.u32 %s1191_s15, 13 }
  0x24   : > { %p1295_p3 = por %p1471_p0, %p34_p12  ;;  %s833_s9 = sshll.u32 %s148_s7, 9 }
  0x25   : > { %s1304_s17 = scalar_lea.hbm %s1459_s0, %s847_s8  ;;  %s152_s21 = scalar_lea.vmem [#allocation2], %s833_s9 }
  0x26   : > { %s1472_s6 = scalar_select %p1295_p3, 1, 0 }
  0x27   : > { %s160_s22 = sshll.u32 %s152_s21, 4  ;;  %p1306_p11 = pnand %p1029_p2, %p36_p13  ;;  %s1310_s22 = int_to_ptr.vmem [resolvable:$true] %s160_s22 }
  0x28   : > { %s1312_s25 = scalar_lea.sflag [#allocation3], %s148_s7  ;;  %s1095_s26 = scalar_lea.hbm %s1304_s17, 8192 }
  0x29   : > { %p1096_p5 = scmp.ne.s32.totalorder %s1304_s17, %s1095_s26  ;;  %p1097_p7 = pneg %p1306_p11 }
  0x2a   : > { %s1100_s29 = scalar_lea.hbm %s1459_s0, 16384  ;;  %p1101_p10 = scmp.lt.s32.totalorder %s1304_s17, %s1459_s0 }
  0x2b   : > { %p1098_p9 = pnand %p1097_p7, %p1096_p5  ;;  %p1102_p2 = scmp.lt.s32.totalorder %s1100_s29, %s1095_s26 }
  0x2d   : > { %p1099_p12 = pneg %p1098_p9  ;;  %p1103_p13 = por %p1102_p2, %p1101_p10 }
  0x2f   : > { %p1104_p0 = pnand %p1103_p13, %p1099_p12 }
  0x31   : > { %1107 = shalt.err (!%p1104_p0)
}
  0x32   : > { %s1108_s7 = scalar_lea.vmem %s1310_s22, 8192  ;;  %s1196_s8 = smov [#allocation2]  }
  0x33   : > { %p1109_p1 = scmp.ne.s32.totalorder %s1310_s22, %s1108_s7  ;;  %s1113_s9 = sshll.u32 %s1196_s8, 4  ;;  %s1114_s9 = int_to_ptr.vmem [resolvable:$false] %s1113_s9 }
  0x34   : > { %s1115_s10 = scalar_lea.vmem %s1114_s9, 16384  ;;  %p1116_p9 = scmp.lt.s32.totalorder %s1310_s22, %s1114_s9 }
  0x35   : > { %p1111_p6 = pnand %p1109_p1, %p1097_p7  ;;  %p1117_p3 = scmp.lt.s32.totalorder %s1115_s10, %s1108_s7 }
  0x37   : > { %p1112_p5 = pneg %p1111_p6  ;;  %p1118_p4 = por %p1117_p3, %p1116_p9 }
  0x39   : > { %p1119_p8 = pnand %p1118_p4, %p1112_p5 }
  0x3b   : > { %1122 = shalt.err (!%p1119_p8)
}
  0x3c   : > { %s1197_s11 = smov 512   ;;  %s1198_s21 = smov 32  }
  0x3d   : > { %1023 = dma.hbm_to_vmem [thread:$0]  (!%p1306_p11), %s1304_s17, 8192, %s1310_s22, %s1312_s25, %s1197_s11, %s1197_s11, %s1198_s21  }
  0x3e   : > { %p1474_p1 = scmp.ne.s32.totalorder %s1469_s20, 0 }
  0x3f   : > { %s1336_s26 = sand.u32 (!%p1474_p1), 1, %s1183_s13   ;;  %p1475_p4 = scmp.ne.s32.totalorder (!%p1474_p1), %s1467_s18, 0 }
  0x40   : > { %172 = sbr.rel (%p1474_p1) target bundleno = 402 (0x192), region = 32  ;;  %s838_s27 = sshll.u32 (!%p1474_p1), %s1336_s26, 9 }
  0x41   : > { %s175_s28 = scalar_lea.sflag (!%p1474_p1), [#allocation3], %s1336_s26  ;;  %s1340_s29 = scalar_lea.vmem (!%p1474_p1), [#allocation2], %s838_s27 }
  0x45   : > { %1166 = dma.done.wait (%p1475_p4), %s175_s28, 8192  }
  0x46   : > { %1168 = vsyncadd (%p1475_p4), %s175_s28, 4294959104  ;;  %p1476_p6 = scmp.eq.s32.totalorder %s1241_s16, 0 }
  0x48   : > { %1170 = dma.done.wait (%p1476_p6), [#allocation6], 8192   ;;  %p1477_p8 = pmov %p1476_p6 }
  0x49   : > { %v301_v0 = vld [vmem:[#allocation5 + $0xf8] sm:$0xff]  ;;  %v300_v4 = vld [vmem:[#allocation5 + $0xf0] sm:$0xff]  ;;  %v299_v8 = vld [vmem:[#allocation5 + $0xe8] sm:$0xff]  ;;  %s840_s17 = sshll.u32 %s1336_s26, 3  ;;  %vm713_vm0 = vcmask 1041409   ;;  %vm716_vm1 = vcmask 1042434  }
  0x4a   : > { %1172 = vsyncadd (%p1477_p8), [#allocation6], 4294959104  ;;  %v333_v1 = vld [vmem:[#allocation5 + $0x1f8] sm:$0xff]  ;;  %848 = vmatprep.subr.mxu0 %v301_v0  ;;  %v332_v5 = vld [vmem:[#allocation5 + $0x1f0] sm:$0xff]  ;;  %vm719_vm2 = vcmask 1043459   ;;  %vm722_vm3 = vcmask 1044484  }
  0x4b   : > { %v285_v2 = vld [vmem:[#allocation5 + $0x78] sm:$0xff]  ;;  %928 = vmatprep.subr.mxu1 %v333_v1  ;;  %v284_v6 = vld [vmem:[#allocation5 + $0x70] sm:$0xff]  ;;  %v331_v9 = vld [vmem:[#allocation5 + $0x1e8] sm:$0xff]  ;;  %vm725_vm4 = vcmask 1045509   ;;  %vm728_vm5 = vcmask 1046534   ;;  %s843_s22 = sshll.u32 %s1241_s16, 7 }
  0x4c   : > { %v317_v3 = vld [vmem:[#allocation5 + $0x178] sm:$0xff]  ;;  %849 = vmatpush3.msra.mxu0 %v285_v2  ;;  %v316_v7 = vld [vmem:[#allocation5 + $0x170] sm:$0xff]  ;;  %v283_v10 = vld [vmem:[#allocation5 + $0x68] sm:$0xff]  ;;  %s204_s23 = scalar_lea.vmem [#allocation7], %s840_s17  ;;  %vm731_vm6 = vcmask 1047559   ;;  %s1422_s7 = scalar_lea.hbm %s1462_s3, %s843_s22 }
  0x4d   : > { %929 = vmatpush3.msra.mxu1 %v317_v3  ;;  %850 = vmatprep.subr.mxu0 %v300_v4  ;;  %v315_v11 = vld [vmem:[#allocation5 + $0x168] sm:$0xff]  ;;  %v298_v12 = vld [vmem:[#allocation5 + $0xe0] sm:$0xff]  ;;  %v297_v16 = vld [vmem:[#allocation5 + $0xd8] sm:$0xff]  ;;  %s749_s25 = sshll.u32 %s204_s23, 4  ;;  %s736_s8 = scalar_lea.sflag [#allocation4], %s1336_s26  ;;  %s750_s25 = int_to_ptr.vmem [resolvable:$true] %s749_s25 }
  0x4e   : > { %930 = vmatprep.subr.mxu1 %v332_v5  ;;  %851 = vmatpush3.msra.mxu0 %v284_v6  ;;  %v330_v13 = vld [vmem:[#allocation5 + $0x1e0] sm:$0xff]  ;;  %v329_v17 = vld [vmem:[#allocation5 + $0x1d8] sm:$0xff]  ;;  %v296_v20 = vld [vmem:[#allocation5 + $0xd0] sm:$0xff]  ;;  %s1123_s9 = scalar_lea.vmem %s750_s25, 128  ;;  %p1478_p11 = scmp.ne.s32.totalorder %s1472_s6, 0 }
  0x4f   : > { %931 = vmatpush3.msra.mxu1 %v316_v7  ;;  %852 = vmatprep.subr.mxu0 %v299_v8  ;;  %v282_v14 = vld [vmem:[#allocation5 + $0x60] sm:$0xff]  ;;  %v281_v18 = vld [vmem:[#allocation5 + $0x58] sm:$0xff]  ;;  %v328_v21 = vld [vmem:[#allocation5 + $0x1d0] sm:$0xff]  ;;  %p1124_p3 = scmp.ne.s32.totalorder %s750_s25, %s1123_s9  ;;  %s1199_s16 = smov [#allocation7]  }
  0x50   : > { %932 = vmatprep.subr.mxu1 %v331_v9  ;;  %v314_v15 = vld [vmem:[#allocation5 + $0x160] sm:$0xff]  ;;  %853 = vmatpush3.msra.mxu0 %v283_v10  ;;  %v313_v19 = vld [vmem:[#allocation5 + $0x158] sm:$0xff]  ;;  %v280_v22 = vld [vmem:[#allocation5 + $0x50] sm:$0xff]  ;;  %s1127_s10 = sshll.u32 %s1199_s16, 4  ;;  %s1128_s10 = int_to_ptr.vmem [resolvable:$false] %s1127_s10 }
  0x51   : > { %933 = vmatpush3.msra.mxu1 %v315_v11  ;;  %854 = vmatprep.subr.mxu0 %v298_v12  ;;  %v312_v23 = vld [vmem:[#allocation5 + $0x150] sm:$0xff]  ;;  %v295_v24 = vld [vmem:[#allocation5 + $0xc8] sm:$0xff]  ;;  %v294_v28 = vld [vmem:[#allocation5 + $0xc0] sm:$0xff]  ;;  %p1125_p7 = pnand %p1124_p3, %p1478_p11  ;;  %s1129_s11 = scalar_lea.vmem %s1128_s10, 256 }
  0x52   : > { %934 = vmatprep.subr.mxu1 %v330_v13  ;;  %855 = vmatpush3.msra.mxu0 %v282_v14  ;;  %v327_v25 = vld [vmem:[#allocation5 + $0x1c8] sm:$0xff]  ;;  %v326_v29 = vld [vmem:[#allocation5 + $0x1c0] sm:$0xff]  ;;  %v293_v32 = vld [vmem:[#allocation5 + $0xb8] sm:$0xff]  ;;  %p1130_p10 = scmp.lt.s32.totalorder %s750_s25, %s1128_s10  ;;  %p1131_p2 = scmp.lt.s32.totalorder %s1129_s11, %s1123_s9 }
  0x53   : > { %935 = vmatpush3.msra.mxu1 %v314_v15  ;;  %856 = vmatprep.subr.mxu0 %v297_v16  ;;  %v279_v26 = vld [vmem:[#allocation5 + $0x48] sm:$0xff]  ;;  %v278_v30 = vld [vmem:[#allocation5 + $0x40] sm:$0xff]  ;;  %v325_v33 = vld [vmem:[#allocation5 + $0x1b8] sm:$0xff]  ;;  %p1126_p12 = pneg %p1125_p7 }
  0x54   : > { %936 = vmatprep.subr.mxu1 %v329_v17  ;;  %857 = vmatpush3.msra.mxu0 %v281_v18  ;;  %v311_v27 = vld [vmem:[#allocation5 + $0x148] sm:$0xff]  ;;  %v310_v31 = vld [vmem:[#allocation5 + $0x140] sm:$0xff]  ;;  %v277_v34 = vld [vmem:[#allocation5 + $0x38] sm:$0xff]  ;;  %p1132_p13 = por %p1131_p2, %p1130_p10 }
  0x55   : > { %937 = vmatpush3.msra.mxu1 %v313_v19  ;;  %858 = vmatprep.subr.mxu0 %v296_v20  ;;  %v309_v35 = vld [vmem:[#allocation5 + $0x138] sm:$0xff]  ;;  %v292_v36 = vld [vmem:[#allocation5 + $0xb0] sm:$0xff]  ;;  %v291_v40 = vld [vmem:[#allocation5 + $0xa8] sm:$0xff] }
  0x56   : > { %938 = vmatprep.subr.mxu1 %v328_v21  ;;  %859 = vmatpush3.msra.mxu0 %v280_v22  ;;  %v324_v37 = vld [vmem:[#allocation5 + $0x1b0] sm:$0xff]  ;;  %v323_v41 = vld [vmem:[#allocation5 + $0x1a8] sm:$0xff]  ;;  %v290_v44 = vld [vmem:[#allocation5 + $0xa0] sm:$0xff]  ;;  %p1133_p0 = pnand %p1132_p13, %p1126_p12 }
  0x57   : > { %939 = vmatpush3.msra.mxu1 %v312_v23  ;;  %860 = vmatprep.subr.mxu0 %v295_v24  ;;  %v276_v38 = vld [vmem:[#allocation5 + $0x30] sm:$0xff]  ;;  %v275_v42 = vld [vmem:[#allocation5 + $0x28] sm:$0xff]  ;;  %v322_v45 = vld [vmem:[#allocation5 + $0x1a0] sm:$0xff] }
  0x58   : > { %940 = vmatprep.subr.mxu1 %v327_v25  ;;  %861 = vmatpush3.msra.mxu0 %v279_v26  ;;  %v308_v39 = vld [vmem:[#allocation5 + $0x130] sm:$0xff]  ;;  %v307_v43 = vld [vmem:[#allocation5 + $0x128] sm:$0xff]  ;;  %v274_v46 = vld [vmem:[#allocation5 + $0x20] sm:$0xff] }
  0x59   : > { %941 = vmatpush3.msra.mxu1 %v311_v27  ;;  %862 = vmatprep.subr.mxu0 %v294_v28  ;;  %v306_v47 = vld [vmem:[#allocation5 + $0x120] sm:$0xff]  ;;  %v289_v48 = vld [vmem:[#allocation5 + $0x98] sm:$0xff]  ;;  %v288_v52 = vld [vmem:[#allocation5 + $0x90] sm:$0xff] }
  0x5a   : > { %942 = vmatprep.subr.mxu1 %v326_v29  ;;  %863 = vmatpush3.msra.mxu0 %v278_v30  ;;  %v321_v49 = vld [vmem:[#allocation5 + $0x198] sm:$0xff]  ;;  %v320_v53 = vld [vmem:[#allocation5 + $0x190] sm:$0xff]  ;;  %v287_v56 = vld [vmem:[#allocation5 + $0x88] sm:$0xff] }
  0x5b   : > { %943 = vmatpush3.msra.mxu1 %v310_v31  ;;  %864 = vmatprep.subr.mxu0 %v293_v32  ;;  %v273_v50 = vld [vmem:[#allocation5 + $0x18] sm:$0xff]  ;;  %v272_v54 = vld [vmem:[#allocation5 + $0x10] sm:$0xff]  ;;  %v319_v57 = vld [vmem:[#allocation5 + $0x188] sm:$0xff] }
  0x5c   : > { %944 = vmatprep.subr.mxu1 %v325_v33  ;;  %865 = vmatpush3.msra.mxu0 %v277_v34  ;;  %v305_v51 = vld [vmem:[#allocation5 + $0x118] sm:$0xff]  ;;  %v304_v55 = vld [vmem:[#allocation5 + $0x110] sm:$0xff]  ;;  %v271_v58 = vld [vmem:[#allocation5 + $0x8] sm:$0xff] }
  0x5d   : > { %945 = vmatpush3.msra.mxu1 %v309_v35  ;;  %866 = vmatprep.subr.mxu0 %v292_v36  ;;  %v303_v59 = vld [vmem:[#allocation5 + $0x108] sm:$0xff]  ;;  %v286_v60 = vld [vmem:[#allocation5 + $0x80] sm:$0xff]  ;;  %v209_v1 = vld [vmem:[%s1340_s29 + $0x18] sm:$0xff] }
  0x5e   : > { %946 = vmatprep.subr.mxu1 %v324_v37  ;;  %867 = vmatpush3.msra.mxu0 %v276_v38  ;;  %v318_v61 = vld [vmem:[#allocation5 + $0x180] sm:$0xff]  ;;  %v207_v63 = vld [vmem:[%s1340_s29 + $0x8] sm:$0xff]  ;;  %v208_v3 = vld [vmem:[%s1340_s29 + $0x10] sm:$0xff] }
  0x5f   : > { %947 = vmatpush3.msra.mxu1 %v308_v39  ;;  %868 = vmatprep.subr.mxu0 %v291_v40  ;;  %v270_v62 = vld [vmem:[#allocation5] sm:$0xff]  ;;  %v211_v4 = vld [vmem:[%s1340_s29 + $0x28] sm:$0xff]  ;;  %v213_v5 = vld [vmem:[%s1340_s29 + $0x38] sm:$0xff] }
  0x60   : > { %948 = vmatprep.subr.mxu1 %v323_v41  ;;  %869 = vmatpush3.msra.mxu0 %v275_v42  ;;  %v302_v0 = vld [vmem:[#allocation5 + $0x100] sm:$0xff]  ;;  %v212_v7 = vld [vmem:[%s1340_s29 + $0x30] sm:$0xff]  ;;  %v215_v8 = vld [vmem:[%s1340_s29 + $0x48] sm:$0xff] }
  0x61   : > { %949 = vmatpush3.msra.mxu1 %v307_v43  ;;  %870 = vmatprep.subr.mxu0 %v290_v44  ;;  %v206_v2 = vld [vmem:[%s1340_s29] sm:$0xff]  ;;  %v217_v9 = vld [vmem:[%s1340_s29 + $0x58] sm:$0xff]  ;;  %v216_v11 = vld [vmem:[%s1340_s29 + $0x50] sm:$0xff] }
  0x62   : > { %950 = vmatprep.subr.mxu1 %v322_v45  ;;  %871 = vmatpush3.msra.mxu0 %v274_v46  ;;  %v210_v6 = vld [vmem:[%s1340_s29 + $0x20] sm:$0xff]  ;;  %v219_v12 = vld [vmem:[%s1340_s29 + $0x68] sm:$0xff]  ;;  %v221_v13 = vld [vmem:[%s1340_s29 + $0x78] sm:$0xff] }
  0x63   : > { %951 = vmatpush3.msra.mxu1 %v306_v47  ;;  %872 = vmatprep.subr.mxu0 %v289_v48  ;;  %v214_v10 = vld [vmem:[%s1340_s29 + $0x40] sm:$0xff]  ;;  %v220_v15 = vld [vmem:[%s1340_s29 + $0x70] sm:$0xff]  ;;  %v223_v16 = vld [vmem:[%s1340_s29 + $0x88] sm:$0xff] }
  0x64   : > { %952 = vmatprep.subr.mxu1 %v321_v49  ;;  %873 = vmatpush3.msra.mxu0 %v273_v50  ;;  %v218_v14 = vld [vmem:[%s1340_s29 + $0x60] sm:$0xff]  ;;  %v225_v17 = vld [vmem:[%s1340_s29 + $0x98] sm:$0xff]  ;;  %v224_v19 = vld [vmem:[%s1340_s29 + $0x90] sm:$0xff] }
  0x65   : > { %953 = vmatpush3.msra.mxu1 %v305_v51  ;;  %874 = vmatprep.subr.mxu0 %v288_v52  ;;  %v222_v18 = vld [vmem:[%s1340_s29 + $0x80] sm:$0xff]  ;;  %v227_v20 = vld [vmem:[%s1340_s29 + $0xa8] sm:$0xff]  ;;  %v229_v21 = vld [vmem:[%s1340_s29 + $0xb8] sm:$0xff] }
  0x66   : > { %954 = vmatprep.subr.mxu1 %v320_v53  ;;  %875 = vmatpush3.msra.mxu0 %v272_v54  ;;  %v226_v22 = vld [vmem:[%s1340_s29 + $0xa0] sm:$0xff]  ;;  %v228_v23 = vld [vmem:[%s1340_s29 + $0xb0] sm:$0xff]  ;;  %v231_v24 = vld [vmem:[%s1340_s29 + $0xc8] sm:$0xff] }
  0x67   : > { %955 = vmatpush3.msra.mxu1 %v304_v55  ;;  %876 = vmatprep.subr.mxu0 %v287_v56  ;;  %v233_v25 = vld [vmem:[%s1340_s29 + $0xd8] sm:$0xff]  ;;  %v230_v26 = vld [vmem:[%s1340_s29 + $0xc0] sm:$0xff]  ;;  %v232_v27 = vld [vmem:[%s1340_s29 + $0xd0] sm:$0xff] }
  0x68   : > { %956 = vmatprep.subr.mxu1 %v319_v57  ;;  %877 = vmatpush3.msra.mxu0 %v271_v58  ;;  %v235_v28 = vld [vmem:[%s1340_s29 + $0xe8] sm:$0xff]  ;;  %v237_v29 = vld [vmem:[%s1340_s29 + $0xf8] sm:$0xff]  ;;  %v234_v30 = vld [vmem:[%s1340_s29 + $0xe0] sm:$0xff] }
  0x69   : > { %957 = vmatpush3.msra.mxu1 %v303_v59  ;;  %878 = vmatprep.subr.mxu0 %v286_v60  ;;  %v236_v31 = vld [vmem:[%s1340_s29 + $0xf0] sm:$0xff]  ;;  %v239_v32 = vld [vmem:[%s1340_s29 + $0x108] sm:$0xff]  ;;  %v241_v33 = vld [vmem:[%s1340_s29 + $0x118] sm:$0xff] }
  0x6a   : > { %958 = vmatprep.subr.mxu1 %v318_v61  ;;  %879 = vmatpush3.msra.mxu0 %v270_v62  ;;  %v238_v34 = vld [vmem:[%s1340_s29 + $0x100] sm:$0xff]  ;;  %v240_v35 = vld [vmem:[%s1340_s29 + $0x110] sm:$0xff]  ;;  %v243_v36 = vld [vmem:[%s1340_s29 + $0x128] sm:$0xff] }
  0x6b   : > { %398 = vmatprep.mubr.f32.mxu0 %v207_v63  ;;  %959 = vmatpush3.msra.mxu1 %v302_v0  ;;  %v245_v37 = vld [vmem:[%s1340_s29 + $0x138] sm:$0xff]  ;;  %v242_v38 = vld [vmem:[%s1340_s29 + $0x120] sm:$0xff]  ;;  %v244_v39 = vld [vmem:[%s1340_s29 + $0x130] sm:$0xff] }
  0x6c   : > { %543 = vmatprep.mubr.f32.mxu1 %v209_v1  ;;  %399 = vmatmul.mubr.f32.vlgmr.msra.gmra.mxu0 %v206_v2  ;;  %v247_v40 = vld [vmem:[%s1340_s29 + $0x148] sm:$0xff]  ;;  %v249_v41 = vld [vmem:[%s1340_s29 + $0x158] sm:$0xff]  ;;  %v246_v42 = vld [vmem:[%s1340_s29 + $0x140] sm:$0xff] }
  0x6d   : > { %544 = vmatmul.mubr.f32.vlgmr.msra.gmra.mxu1 %v208_v3  ;;  %403 = vmatprep.mubr.f32.mxu0 %v211_v4  ;;  %v248_v43 = vld [vmem:[%s1340_s29 + $0x150] sm:$0xff]  ;;  %v251_v44 = vld [vmem:[%s1340_s29 + $0x168] sm:$0xff]  ;;  %v253_v45 = vld [vmem:[%s1340_s29 + $0x178] sm:$0xff] }
  0x6e   : > { %548 = vmatprep.mubr.f32.mxu1 %v213_v5  ;;  %v250_v46 = vld [vmem:[%s1340_s29 + $0x160] sm:$0xff]  ;;  %v252_v47 = vld [vmem:[%s1340_s29 + $0x170] sm:$0xff]  ;;  %v255_v48 = vld [vmem:[%s1340_s29 + $0x188] sm:$0xff] }
  0x6f   : > { %v257_v49 = vld [vmem:[%s1340_s29 + $0x198] sm:$0xff]  ;;  %v254_v50 = vld [vmem:[%s1340_s29 + $0x180] sm:$0xff]  ;;  %v256_v51 = vld [vmem:[%s1340_s29 + $0x190] sm:$0xff] }
  0x70   : > { %404 = vmatmul.mubr.f32.gmra.mxu0 %v210_v6  ;;  %v259_v52 = vld [vmem:[%s1340_s29 + $0x1a8] sm:$0xff]  ;;  %v261_v53 = vld [vmem:[%s1340_s29 + $0x1b8] sm:$0xff]  ;;  %v258_v54 = vld [vmem:[%s1340_s29 + $0x1a0] sm:$0xff] }
  0x71   : > { %549 = vmatmul.mubr.f32.gmra.mxu1 %v212_v7  ;;  %408 = vmatprep.mubr.f32.mxu0 %v215_v8  ;;  %v260_v55 = vld [vmem:[%s1340_s29 + $0x1b0] sm:$0xff]  ;;  %v263_v56 = vld [vmem:[%s1340_s29 + $0x1c8] sm:$0xff]  ;;  %v265_v57 = vld [vmem:[%s1340_s29 + $0x1d8] sm:$0xff] }
  0x72   : > { %553 = vmatprep.mubr.f32.mxu1 %v217_v9  ;;  %v262_v58 = vld [vmem:[%s1340_s29 + $0x1c0] sm:$0xff]  ;;  %v264_v59 = vld [vmem:[%s1340_s29 + $0x1d0] sm:$0xff]  ;;  %v267_v60 = vld [vmem:[%s1340_s29 + $0x1e8] sm:$0xff] }
  0x73   : > { %v269_v61 = vld [vmem:[%s1340_s29 + $0x1f8] sm:$0xff]  ;;  %v266_v62 = vld [vmem:[%s1340_s29 + $0x1e0] sm:$0xff]  ;;  %v268_v63 = vld [vmem:[%s1340_s29 + $0x1f0] sm:$0xff] }
  0x74   : > { %409 = vmatmul.mubr.f32.gmra.mxu0 %v214_v10 }
  0x75   : > { %554 = vmatmul.mubr.f32.gmra.mxu1 %v216_v11  ;;  %413 = vmatprep.mubr.f32.mxu0 %v219_v12 }
  0x76   : > { %558 = vmatprep.mubr.f32.mxu1 %v221_v13 }
  0x78   : > { %414 = vmatmul.mubr.f32.gmra.mxu0 %v218_v14 }
  0x79   : > { %559 = vmatmul.mubr.f32.gmra.mxu1 %v220_v15  ;;  %418 = vmatprep.mubr.f32.mxu0 %v223_v16 }
  0x7a   : > { %563 = vmatprep.mubr.f32.mxu1 %v225_v17 }
  0x7c   : > { %419 = vmatmul.mubr.f32.gmra.mxu0 %v222_v18 }
  0x7d   : > { %564 = vmatmul.mubr.f32.gmra.mxu1 %v224_v19  ;;  %423 = vmatprep.mubr.f32.mxu0 %v227_v20 }
  0x7e   : > { %568 = vmatprep.mubr.f32.mxu1 %v229_v21 }
  0x80   : > { %424 = vmatmul.mubr.f32.gmra.mxu0 %v226_v22 }
  0x81   : > { %569 = vmatmul.mubr.f32.gmra.mxu1 %v228_v23  ;;  %428 = vmatprep.mubr.f32.mxu0 %v231_v24 }
  0x82   : > { %573 = vmatprep.mubr.f32.mxu1 %v233_v25 }
  0x84   : > { %429 = vmatmul.mubr.f32.gmra.mxu0 %v230_v26 }
  0x85   : > { %574 = vmatmul.mubr.f32.gmra.mxu1 %v232_v27  ;;  %433 = vmatprep.mubr.f32.mxu0 %v235_v28 }
  0x86   : > { %578 = vmatprep.mubr.f32.mxu1 %v237_v29 }
  0x88   : > { %434 = vmatmul.mubr.f32.gmra.mxu0 %v234_v30 }
  0x89   : > { %579 = vmatmul.mubr.f32.gmra.mxu1 %v236_v31  ;;  %438 = vmatprep.mubr.f32.mxu0 %v239_v32 }
  0x8a   : > { %583 = vmatprep.mubr.f32.mxu1 %v241_v33 }
  0x8c   : > { %439 = vmatmul.mubr.f32.gmra.mxu0 %v238_v34 }
  0x8d   : > { %584 = vmatmul.mubr.f32.gmra.mxu1 %v240_v35  ;;  %443 = vmatprep.mubr.f32.mxu0 %v243_v36 }
  0x8e   : > { %588 = vmatprep.mubr.f32.mxu1 %v245_v37 }
  0x90   : > { %444 = vmatmul.mubr.f32.gmra.mxu0 %v242_v38 }
  0x91   : > { %589 = vmatmul.mubr.f32.gmra.mxu1 %v244_v39  ;;  %448 = vmatprep.mubr.f32.mxu0 %v247_v40 }
  0x92   : > { %593 = vmatprep.mubr.f32.mxu1 %v249_v41 }
  0x94   : > { %449 = vmatmul.mubr.f32.gmra.mxu0 %v246_v42 }
  0x95   : > { %594 = vmatmul.mubr.f32.gmra.mxu1 %v248_v43  ;;  %453 = vmatprep.mubr.f32.mxu0 %v251_v44 }
  0x96   : > { %598 = vmatprep.mubr.f32.mxu1 %v253_v45 }
  0x98   : > { %454 = vmatmul.mubr.f32.gmra.mxu0 %v250_v46 }
  0x99   : > { %599 = vmatmul.mubr.f32.gmra.mxu1 %v252_v47  ;;  %458 = vmatprep.mubr.f32.mxu0 %v255_v48 }
  0x9a   : > { %603 = vmatprep.mubr.f32.mxu1 %v257_v49 }
  0x9c   : > { %459 = vmatmul.mubr.f32.gmra.mxu0 %v254_v50 }
  0x9d   : > { %604 = vmatmul.mubr.f32.gmra.mxu1 %v256_v51  ;;  %463 = vmatprep.mubr.f32.mxu0 %v259_v52 }
  0x9e   : > { %608 = vmatprep.mubr.f32.mxu1 %v261_v53 }
  0xa0   : > { %464 = vmatmul.mubr.f32.gmra.mxu0 %v258_v54 }
  0xa1   : > { %609 = vmatmul.mubr.f32.gmra.mxu1 %v260_v55  ;;  %468 = vmatprep.mubr.f32.mxu0 %v263_v56 }
  0xa2   : > { %613 = vmatprep.mubr.f32.mxu1 %v265_v57 }
  0xa4   : > { %469 = vmatmul.mubr.f32.gmra.mxu0 %v262_v58 }
  0xa5   : > { %614 = vmatmul.mubr.f32.gmra.mxu1 %v264_v59  ;;  %473 = vmatprep.mubr.f32.mxu0 %v267_v60 }
  0xa6   : > { %618 = vmatprep.mubr.f32.mxu1 %v269_v61 }
  0xa8   : > { %474 = vmatmul.mubr.f32.gmra.mxu0 %v266_v62 }
  0xa9   : > { %619 = vmatmul.mubr.f32.gmra.mxu1 %v268_v63 }
 0x12c   : > { %v880_v0 = vpop.f32.mrf.mxu0 }
 0x12d   : > { %v960_v1 = vpop.f32.mrf.mxu1 }
 0x12e   : > { %v881_v2 = vpop.f32.mrf.mxu0 }
 0x12f   : > { %v961_v3 = vpop.f32.mrf.mxu1  ;;  %v882_v59 = vadd.f32 %v881_v2, %v880_v0 }
 0x130   : > { %v883_v4 = vpop.f32.mrf.mxu0  ;;  %v962_v62 = vadd.f32 %v961_v3, %v960_v1 }
 0x131   : > { %v963_v5 = vpop.f32.mrf.mxu1 }
 0x132   : > { %v884_v6 = vpop.f32.mrf.mxu0 }
 0x133   : > { %v964_v7 = vpop.f32.mrf.mxu1  ;;  %v885_v49 = vadd.f32 %v884_v6, %v883_v4 }
 0x134   : > { %v886_v8 = vpop.f32.mrf.mxu0  ;;  %v965_v50 = vadd.f32 %v964_v7, %v963_v5 }
 0x135   : > { %v966_v9 = vpop.f32.mrf.mxu1 }
 0x136   : > { %v887_v10 = vpop.f32.mrf.mxu0  ;;  %v551_v4 = vadd.f32 %v965_v50, %v885_v49 }
 0x137   : > { %v967_v11 = vpop.f32.mrf.mxu1  ;;  %v888_v36 = vadd.f32 %v887_v10, %v886_v8 }
 0x138   : > { %v889_v12 = vpop.f32.mrf.mxu0  ;;  %v968_v37 = vadd.f32 %v967_v11, %v966_v9 }
 0x139   : > { %v969_v13 = vpop.f32.mrf.mxu1 }
 0x13a   : > { %v890_v14 = vpop.f32.mrf.mxu0  ;;  %v556_v53 = vadd.f32 %v968_v37, %v888_v36 }
 0x13b   : > { %v970_v15 = vpop.f32.mrf.mxu1  ;;  %v891_v32 = vadd.f32 %v890_v14, %v889_v12 }
 0x13c   : > { %v892_v16 = vpop.f32.mrf.mxu0  ;;  %v971_v33 = vadd.f32 %v970_v15, %v969_v13 }
 0x13d   : > { %v972_v17 = vpop.f32.mrf.mxu1 }
 0x13e   : > { %v893_v18 = vpop.f32.mrf.mxu0  ;;  %v561_v44 = vadd.f32 %v971_v33, %v891_v32 }
 0x13f   : > { %v973_v19 = vpop.f32.mrf.mxu1  ;;  %v894_v45 = vadd.f32 %v893_v18, %v892_v16  ;;  %v546_v16 = vadd.f32 %v962_v62, %v882_v59 }
 0x140   : > { %v895_v20 = vpop.f32.mrf.mxu0  ;;  %v974_v46 = vadd.f32 %v973_v19, %v972_v17  ;;  %v631_v63 = vadd.f32 %v561_v44, %v556_v53 }
 0x141   : > { %v975_v21 = vpop.f32.mrf.mxu1  ;;  %v624_v3 = vadd.f32 %v551_v4, %v546_v16 }
 0x142   : > { %v896_v22 = vpop.f32.mrf.mxu0  ;;  %v566_v8 = vadd.f32 %v974_v46, %v894_v45  ;;  %v632_v17 = vrot.slane %v631_v63, 4 }
 0x143   : > { %v976_v23 = vpop.f32.mrf.mxu1  ;;  %v897_v38 = vadd.f32 %v896_v22, %v895_v20  ;;  %v625_v32 = vrot.slane %v624_v3, 4 }
 0x144   : > { %v898_v24 = vpop.f32.mrf.mxu0  ;;  %v977_v39 = vadd.f32 %v976_v23, %v975_v21 }
 0x145   : > { %v978_v25 = vpop.f32.mrf.mxu1  ;;  %v626_v45 = vadd.f32 %v625_v32, %v624_v3 }
 0x146   : > { %v899_v26 = vpop.f32.mrf.mxu0  ;;  %v571_v54 = vadd.f32 %v977_v39, %v897_v38 }
 0x147   : > { %v979_v27 = vpop.f32.mrf.mxu1  ;;  %v900_v51 = vadd.f32 %v899_v26, %v898_v24  ;;  %v633_v26 = vadd.f32 %v632_v17, %v631_v63 }
 0x148   : > { %v901_v28 = vpop.f32.mrf.mxu0  ;;  %v980_v52 = vadd.f32 %v979_v27, %v978_v25  ;;  %v638_v5 = vadd.f32 %v571_v54, %v566_v8 }
 0x149   : > { %v981_v29 = vpop.f32.mrf.mxu1  ;;  %v634_v38 = vrot.slane %v633_v26, 2 }
 0x14a   : > { %v902_v30 = vpop.f32.mrf.mxu0  ;;  %v576_v12 = vadd.f32 %v980_v52, %v900_v51  ;;  %v639_v20 = vrot.slane %v638_v5, 4 }
 0x14b   : > { %v982_v31 = vpop.f32.mrf.mxu1  ;;  %v903_v42 = vadd.f32 %v902_v30, %v901_v28  ;;  %v635_v53 = vadd.f32 %v634_v38, %v633_v26 }
 0x14c   : > { %v904_v34 = vpop.f32.mrf.mxu0  ;;  %v983_v43 = vadd.f32 %v982_v31, %v981_v29  ;;  %v640_v33 = vadd.f32 %v639_v20, %v638_v5 }
 0x14d   : > { %v984_v35 = vpop.f32.mrf.mxu1 }
 0x14e   : > { %v905_v40 = vpop.f32.mrf.mxu0  ;;  %v581_v60 = vadd.f32 %v983_v43, %v903_v42  ;;  %v641_v46 = vrot.slane %v640_v33, 2 }
 0x14f   : > { %v985_v41 = vpop.f32.mrf.mxu1  ;;  %v906_v55 = vadd.f32 %v905_v40, %v904_v34 }
 0x150   : > { %v907_v47 = vpop.f32.mrf.mxu0  ;;  %v986_v56 = vadd.f32 %v985_v41, %v984_v35  ;;  %v645_v15 = vadd.f32 %v581_v60, %v576_v12  ;;  %v627_v60 = vrot.slane %v626_v45, 2 }
 0x151   : > { %v987_v48 = vpop.f32.mrf.mxu1 }
 0x152   : > { %v908_v57 = vpop.f32.mrf.mxu0  ;;  %v586_v6 = vadd.f32 %v986_v56, %v906_v55  ;;  %v646_v23 = vrot.slane %v645_v15, 4 }
 0x153   : > { %v988_v58 = vpop.f32.mrf.mxu1  ;;  %v909_v61 = vadd.f32 %v908_v57, %v907_v47 }
 0x154   : > { %v989_v9 = vadd.f32 %v988_v58, %v987_v48  ;;  %v910_v10 = vpop.f32.mrf.mxu0  ;;  %v647_v36 = vadd.f32 %v646_v23, %v645_v15 }
 0x155   : > { %v990_v11 = vpop.f32.mrf.mxu1 }
 0x156   : > { %v591_v7 = vadd.f32 %v989_v9, %v909_v61  ;;  %v911_v13 = vpop.f32.mrf.mxu0  ;;  %v648_v49 = vrot.slane %v647_v36, 2  ;;  %v642_v61 = vadd.f32 %v641_v46, %v640_v33 }
 0x157   : > { %v991_v14 = vpop.f32.mrf.mxu1  ;;  %v912_v19 = vadd.f32 %v911_v13, %v910_v10  ;;  %v636_v10 = vrot.slane %v635_v53, 1 }
 0x158   : > { %v652_v18 = vadd.f32 %v591_v7, %v586_v6  ;;  %v913_v0 = vpop.f32.mrf.mxu0  ;;  %v992_v1 = vadd.f32 %v991_v14, %v990_v11  ;;  %v649_v8 = vadd.f32 %v648_v49, %v647_v36  ;;  %v628_v14 = vadd.f32 %v627_v60, %v626_v45 }
 0x159   : > { %v993_v2 = vpop.f32.mrf.mxu1  ;;  %v643_v15 = vrot.slane %v642_v61, 1 }
 0x15a   : > { %v914_v21 = vpop.f32.mrf.mxu0  ;;  %v653_v27 = vrot.slane %v652_v18, 4  ;;  %v596_v30 = vadd.f32 %v992_v1, %v912_v19  ;;  %v637_v1 = vadd.f32 %v636_v10, %v635_v53 }
 0x15b   : > { %v994_v22 = vpop.f32.mrf.mxu1  ;;  %v915_v24 = vadd.f32 %v914_v21, %v913_v0 }
 0x15c   : > { %v995_v25 = vadd.f32 %v994_v22, %v993_v2  ;;  %v916_v28 = vpop.f32.mrf.mxu0  ;;  %v654_v39 = vadd.f32 %v653_v27, %v652_v18  ;;  %v650_v18 = vrot.slane %v649_v8, 1 }
 0x15d   : > { %v996_v29 = vpop.f32.mrf.mxu1 }
 0x15e   : > { %v601_v31 = vadd.f32 %v995_v25, %v915_v24  ;;  %v917_v34 = vpop.f32.mrf.mxu0  ;;  %v655_v54 = vrot.slane %v654_v39, 2  ;;  %v644_v24 = vadd.f32 %v643_v15, %v642_v61  ;;  %v629_v25 = vrot.slane %v628_v14, 1 }
 0x15f   : > { %v997_v35 = vpop.f32.mrf.mxu1  ;;  %v918_v43 = vadd.f32 %v917_v34, %v916_v28  ;;  %v651_v26 = vadd.f32 %v650_v18, %v649_v8 }
 0x160   : > { %v659_v37 = vadd.f32 %v601_v31, %v596_v30  ;;  %v919_v40 = vpop.f32.mrf.mxu0  ;;  %v998_v44 = vadd.f32 %v997_v35, %v996_v29  ;;  %v656_v11 = vadd.f32 %v655_v54, %v654_v39  ;;  %v682_v30 = vmul.f32 0.0625, %v637_v1  ;;  %v841_v39 = vld [vmem:[%s1461_s2] ss:$0 sm:$0xff] }
 0x161   : > { %v999_v41 = vpop.f32.mrf.mxu1  ;;  %v683_v34 = vmul.f32 0.0625, %v644_v24  ;;  %v630_v35 = vadd.f32 %v629_v25, %v628_v14  ;;  %v684_v36 = vmul.f32 0.0625, %v651_v26 }
 0x162   : > { %v660_v42 = vrot.slane %v659_v37, 4  ;;  %v920_v47 = vpop.f32.mrf.mxu0  ;;  %v606_v58 = vadd.f32 %v998_v44, %v918_v43  ;;  %v657_v3 = vrot.slane %v656_v11, 1 }
 0x163   : > { %v1000_v48 = vpop.f32.mrf.mxu1  ;;  %v921_v51 = vadd.f32 %v920_v47, %v919_v40  ;;  %v698_v44 = vadd.f32 %v841_v39, %v683_v34  ;;  %v681_v46 = vmul.f32 0.0625, %v630_v35  ;;  %v699_v47 = vadd.f32 %v841_v39, %v684_v36 }
 0x164   : > { %v661_v50 = vadd.f32 %v660_v42, %v659_v37  ;;  %v1001_v52 = vadd.f32 %v1000_v48, %v999_v41  ;;  %v922_v55 = vpop.f32.mrf.mxu0  ;;  %v658_v29 = vadd.f32 %v657_v3, %v656_v11  ;;  %v697_v41 = vadd.f32 %v841_v39, %v682_v30 }
 0x165   : > { %v1002_v56 = vpop.f32.mrf.mxu1  ;;  %v715_v53 = vrot.slane %v698_v44, 6 }
 0x166   : > { %v662_v57 = vrot.slane %v661_v50, 2  ;;  %v611_v59 = vadd.f32 %v1001_v52, %v921_v51  ;;  %v923_v62 = vpop.f32.mrf.mxu0  ;;  %v685_v40 = vmul.f32 0.0625, %v658_v29 }
 0x167   : > { %v1003_v63 = vpop.f32.mrf.mxu1  ;;  %v924_v7 = vadd.f32 %v923_v62, %v922_v55  ;;  %v696_v55 = vadd.f32 %v841_v39, %v681_v46 }
 0x168   : > { %v666_v9 = vadd.f32 %v611_v59, %v606_v58  ;;  %v925_v12 = vpop.f32.mrf.mxu0  ;;  %v663_v5 = vadd.f32 %v662_v57, %v661_v50  ;;  %v1004_v13 = vadd.f32 %v1003_v63, %v1002_v56  ;;  %v700_v49 = vadd.f32 %v841_v39, %v685_v40 }
 0x169   : > { %v1005_v4 = vpop.f32.mrf.mxu1  ;;  %v712_v50 = vrot.slane %v697_v41, 7  ;;  %v718_v56 = vrot.slane %v699_v47, 5 }
 0x16a   : > { %v667_v6 = vrot.slane %v666_v9, 4  ;;  %v926_v16 = vpop.f32.mrf.mxu0  ;;  %v664_v20 = vrot.slane %v663_v5, 1  ;;  %v616_v22 = vadd.f32 %v1004_v13, %v924_v7  ;;  %v721_v58 = vrot.slane %v700_v49, 4 }
 0x16b   : > { %v1006_v17 = vpop.f32.mrf.mxu1  ;;  %v927_v2 = vadd.f32 %v926_v16, %v925_v12  ;;  %v714_v59 = vsel %vm713_vm0, %v712_v50, %v696_v55 }
 0x16c   : > { %v668_v0 = vadd.f32 %v667_v6, %v666_v9  ;;  %v1007_v19 = vadd.f32 %v1006_v17, %v1005_v4  ;;  %v665_v31 = vadd.f32 %v664_v20, %v663_v5  ;;  %v717_v62 = vsel %vm716_vm1, %v715_v53, %v714_v59 }
 0x16d   : > { %v720_v9 = vsel %vm719_vm2, %v718_v56, %v717_v62 }
 0x16e   : > { %v669_v21 = vrot.slane %v668_v0, 2  ;;  %v621_v23 = vadd.f32 %v1007_v19, %v927_v2  ;;  %v686_v42 = vmul.f32 0.0625, %v665_v31  ;;  %v723_v10 = vsel %vm722_vm3, %v721_v58, %v720_v9 }
 0x170   : > { %v670_v27 = vadd.f32 %v669_v21, %v668_v0  ;;  %v673_v28 = vadd.f32 %v621_v23, %v616_v22  ;;  %v701_v51 = vadd.f32 %v841_v39, %v686_v42 }
 0x172   : > { %v671_v32 = vrot.slane %v670_v27, 1  ;;  %v674_v33 = vrot.slane %v673_v28, 4  ;;  %v724_v60 = vrot.slane %v701_v51, 3 }
 0x174   : > { %v672_v37 = vadd.f32 %v671_v32, %v670_v27  ;;  %v675_v38 = vadd.f32 %v674_v33, %v673_v28  ;;  %v726_v11 = vsel %vm725_vm4, %v724_v60, %v723_v10 }
 0x176   : > { %v676_v43 = vrot.slane %v675_v38, 2  ;;  %v687_v45 = vmul.f32 0.0625, %v672_v37 }
 0x178   : > { %v677_v48 = vadd.f32 %v676_v43, %v675_v38  ;;  %v702_v54 = vadd.f32 %v841_v39, %v687_v45 }
 0x17a   : > { %v678_v52 = vrot.slane %v677_v48, 1  ;;  %v727_v63 = vrot.slane %v702_v54, 2 }
 0x17c   : > { %v679_v57 = vadd.f32 %v678_v52, %v677_v48  ;;  %v729_v4 = vsel %vm728_vm5, %v727_v63, %v726_v11 }
 0x17e   : > { %v688_v61 = vmul.f32 0.0625, %v679_v57 }
 0x180   : > { %v703_v8 = vadd.f32 %v841_v39, %v688_v61 }
 0x182   : > { %v730_v12 = vrot.slane %v703_v8, 1 }
 0x184   : > { %v732_v5 = vsel %vm731_vm6, %v730_v12, %v729_v4 }
 0x185   : > { %734 = vst [vmem:[%s204_s23] sm:$0xff] %v732_v5 }
 0x186   : > { %1136 = shalt.err (!%p1133_p0)
}
 0x187   : > { %s1137_s21 = scalar_lea.hbm %s1422_s7, 128  ;;  %s1141_s28 = scalar_lea.hbm %s1462_s3, 256 }
 0x188   : > { %p1138_p5 = scmp.ne.s32.totalorder %s1422_s7, %s1137_s21  ;;  %p1142_p4 = scmp.lt.s32.totalorder %s1422_s7, %s1462_s3 }
 0x189   : > { %p1143_p6 = scmp.lt.s32.totalorder %s1141_s28, %s1137_s21 }
 0x18a   : > { %p1139_p9 = pnand %p1138_p5, %p1478_p11 }
 0x18b   : > { %p1144_p8 = por %p1143_p6, %p1142_p4 }
 0x18c   : > { %p1140_p1 = pneg %p1139_p9 }
 0x18e   : > { %p1145_p3 = pnand %p1144_p8, %p1140_p1 }
 0x190   : > { %1148 = shalt.err (!%p1145_p3)
}
 0x191   : > { %1014 = dma.vmem_to_hbm [thread:$0]  (%p1478_p11), %s750_s25, 128, %s1422_s7, %s736_s8  }
 0x192 PF: > { %s761_s20 = sand.u32 1, %s1179_s12   ;;  %p1479_p7 = scmp.ne.s32.totalorder %s1468_s19, 0 }
 0x193   : > { %p1480_p12 = scmp.ge.s32.totalorder %s1191_s15, 2  ;;  %s762_s17 = scalar_lea.sflag [#allocation4], %s761_s20 }
 0x195   : > { %p1025_p10 = pnand %p1480_p12, %p1479_p7 }
 0x197   : > { %p1026_p2 = pneg %p1025_p10 }
 0x199   : > { %1174 = dma.done.wait (%p1026_p2), %s762_s17, 128  }
 0x19a   : > { %1176 = vsyncadd (%p1026_p2), %s762_s17, 4294967168  ;;  %p17_p13 = scmp.ge.s32.totalorder %s1274_s24, 4   ;;  %s1481_s12 = smov %s1183_s13 }
 0x19b   : > { %s1482_s13 = smov %s1187_s14  ;;  %s1483_s14 = smov %s1291_s5 }
 0x19c   : > { %s1484_s15 = smov %s1274_s24  ;;  %19 = sbr.rel (!%p17_p13) target bundleno = 6 (0x6), region = 81 }
 0x1a1   :  { %767 = vsyncpa [#allocation3], 1 }
 0x1a2   :  { %769 = vsyncpa [#allocation3 + $0x1], 1 }
 0x1a3   :  { %770 = vsyncpa [#allocation6], 1 }
 0x1a4   :  { %771 = vsyncpa [#allocation4], 1 }
 0x1a5   :  { %773 = vsyncpa [#allocation4 + $0x1], 1 }

</bundles_post_ra>
